<compile_context>
chip_gen: v7x
topology: tpu7x:2x2x1
jax: 0.10.0
libtpu: 0.0.40
codegen_flags: <defaults>
</compile_context>

<pallas_src>
import functools

import jax
import jax.numpy as jnp
from jax import lax
from jax.experimental import pallas as pl
from jax.experimental.pallas import tpu as pltpu

LN_EPS = 1e-5
NORM_EPS_SQ = 1e-24      # (F.normalize eps = 1e-12) ** 2
NEG_INF = -1e30


def _layernorm(x, gamma, beta):
    mu = jnp.mean(x, axis=-1, keepdims=True)
    var = jnp.mean((x - mu) ** 2, axis=-1, keepdims=True)
    return (x - mu) * lax.rsqrt(var + LN_EPS) * gamma + beta


def _gelu_exact(x):
    # nn.GELU() default (approximate='none'): 0.5*x*(1+erf(x/sqrt(2)))
    return 0.5 * x * (1.0 + lax.erf(x * (2.0 ** -0.5)))


def _l2_normalize(x):
    # F.normalize(p=2, dim=-1, eps=1e-12) == x * rsqrt(max(sum(x^2), eps^2))
    return x * lax.rsqrt(jnp.maximum(jnp.sum(x * x, axis=-1, keepdims=True), NORM_EPS_SQ))


# "q @ k^T" contraction (contract last dim of both operands) -- a single MXU op.
NT_DIM_NUMBERS = (((1,), (1,)), ((), ()))


def ca_block_kernel(gscale_ref, x_ref, t_ref,
                    xn_g_ref, xn_b_ref, tn_g_ref, tn_b_ref,
                    wq_ref, wk_ref, wv_ref, wc_ref, bc_ref,
                    ln2_g_ref, ln2_b_ref,
                    w1_ref, b1_ref, w2_ref, b2_ref,
                    o_ref,
                    k_scr, v_scr,
                    *, num_heads, head_dim, tq):
    qi = pl.program_id(1)
    embed_dim = num_heads * head_dim

    # ---- once per batch element: K/V over the full sequence, cached for all query tiles
    @pl.when(qi == 0)
    def _():
        x_all = x_ref[0]                                                    # (N, D) f32
        xn = _layernorm(x_all, xn_g_ref[...], xn_b_ref[...]).astype(jnp.bfloat16)

        def fill(h, carry):
            kh = jnp.dot(xn, wk_ref[h], preferred_element_type=jnp.float32)  # (N, hd)
            vh = jnp.dot(xn, wv_ref[h], preferred_element_type=jnp.float32)
            k_scr[h] = _l2_normalize(kh).astype(jnp.bfloat16)               # qk-norm once
            v_scr[h] = vh.astype(jnp.bfloat16)
            return carry

        lax.fori_loop(0, num_heads, fill, 0)

    # ---- per query-row tile
    g = gscale_ref[0]                                                       # f32 scalar (SMEM)
    g_abs = jnp.abs(g)                                                      # |scores| <= |g|
    t_tile = t_ref[0]                                                       # (tq, D) f32
    tn = _layernorm(t_tile, tn_g_ref[...], tn_b_ref[...]).astype(jnp.bfloat16)

    # additive causal mask for the diagonal KV tile only (col > row within the tile)
    ri = lax.broadcasted_iota(jnp.int32, (tq, tq), 0)
    ci = lax.broadcasted_iota(jnp.int32, (tq, tq), 1)
    diag_mask = jnp.where(ci > ri, jnp.float32(NEG_INF), jnp.float32(0.0))

    row0 = pl.multiple_of(qi * tq, tq)

    def head_body(h, acc):
        qh = jnp.dot(tn, wq_ref[h], preferred_element_type=jnp.float32)     # (tq, hd)
        qh = (_l2_normalize(qh) * g).astype(jnp.bfloat16)                   # fold g_scale into q

        # fully-visible KV tiles j < qi: no mask, max-free softmax (exp(s - |g|) <= 1)
        def kv_body(j, carry):
            num, den = carry
            off = pl.multiple_of(j * tq, tq)
            k_t = k_scr[h, pl.ds(off, tq), :]                               # (tq, hd) bf16
            v_t = v_scr[h, pl.ds(off, tq), :]
            s = lax.dot_general(qh, k_t, dimension_numbers=NT_DIM_NUMBERS,
                                preferred_element_type=jnp.float32) - g_abs
            p = jnp.exp(s)
            den = den + jnp.sum(p, axis=-1, keepdims=True)
            num = num + jnp.dot(p.astype(jnp.bfloat16), v_t,
                                preferred_element_type=jnp.float32)
            return num, den

        num0 = jnp.zeros((tq, head_dim), jnp.float32)
        den0 = jnp.zeros((tq, 1), jnp.float32)
        num, den = lax.fori_loop(0, qi, kv_body, (num0, den0))

        # diagonal KV tile j == qi: apply the causal mask
        k_t = k_scr[h, pl.ds(row0, tq), :]
        v_t = v_scr[h, pl.ds(row0, tq), :]
        s = lax.dot_general(qh, k_t, dimension_numbers=NT_DIM_NUMBERS,
                            preferred_element_type=jnp.float32) - g_abs + diag_mask
        p = jnp.exp(s)
        den = den + jnp.sum(p, axis=-1, keepdims=True)
        num = num + jnp.dot(p.astype(jnp.bfloat16), v_t,
                            preferred_element_type=jnp.float32)

        # normalize AFTER the PV matmul (tq*hd multiplies instead of tq*N)
        # attention dropout (p=0.2) is identity in eval mode
        oh = (num * pl.reciprocal(den, approx=True)).astype(jnp.bfloat16)   # (tq, hd)
        # distribute c_proj over heads (no concatenate)
        return acc + jnp.dot(oh, wc_ref[h], preferred_element_type=jnp.float32)

    acc = lax.fori_loop(0, num_heads, head_body,
                        jnp.zeros((tq, embed_dim), jnp.float32))

    x_tile = x_ref[0, pl.ds(row0, tq), :]                                   # (tq, D) f32
    x1 = x_tile + acc + bc_ref[...]                                         # residual 1

    # FF branch: LN2 -> Linear -> GELU(exact) -> Linear (+ identity dropout) + residual
    x1n = _layernorm(x1, ln2_g_ref[...], ln2_b_ref[...]).astype(jnp.bfloat16)
    h1 = jnp.dot(x1n, w1_ref[...], preferred_element_type=jnp.float32) + b1_ref[...]
    h1 = _gelu_exact(h1).astype(jnp.bfloat16)
    ff = jnp.dot(h1, w2_ref[...], preferred_element_type=jnp.float32) + b2_ref[...]

    o_ref[0] = x1 + ff


def _pick_query_tile(n):
    # v5e MXU is 128x128: cap tq at 128 there; 256 on v6e/v7x (256-wide MXU output).
    cap = 256
    try:
        kind = jax.devices()[0].device_kind.lower()
        if "v5 lite" in kind or "v5lite" in kind or "v5e" in kind:
            cap = 128
    except Exception:
        pass
    for cand in (256, 128, 64, 32, 16, 8):
        if cand <= cap and n % cand == 0:
            return cand
    # TODO(synk): pad N to a multiple of 8 (masking the tail) instead of falling back to a
    # whole-sequence tile for awkward sequence lengths (VMEM blow-up risk on v7x).
    return n


def ca_transformer_block(x, t_embed, params, *, num_heads):
    B, N, D = x.shape
    head_dim = D // num_heads
    Hm = params["ff_w1"].shape[0]   # embed_dim * mlp_scale
    bf16 = jnp.bfloat16

    TQ = _pick_query_tile(N)
    nq = N // TQ

    # Pre-split weights per head (glue). PyTorch Linear stores W as (out, in); y = x @ W^T.
    def heads_in(w):   # (D_out, D_in) -> (H, D_in, hd): y_h = x @ ret[h]
        return jnp.transpose(w.T.reshape(D, num_heads, head_dim), (1, 0, 2)).astype(bf16)

    wq_h = heads_in(params["wq"])
    wk_h = heads_in(params["wk"])
    wv_h = heads_in(params["wv"])
    wc_h = params["wc"].T.reshape(num_heads, head_dim, D).astype(bf16)   # attn_h @ ret[h]
    w1T = params["ff_w1"].T.astype(bf16)                                 # (D, Hm)
    w2T = params["ff_w2"].T.astype(bf16)                                 # (Hm, D)

    row = lambda p: p.reshape(1, -1).astype(jnp.float32)
    gscale = params["g_scale"].reshape(1).astype(jnp.float32)

    inputs = [
        gscale, x, t_embed,
        row(params["xn_g"]), row(params["xn_b"]),
        row(params["tn_g"]), row(params["tn_b"]),
        wq_h, wk_h, wv_h, wc_h, row(params["bc"]),
        row(params["ln2_g"]), row(params["ln2_b"]),
        w1T, row(params["ff_b1"]), w2T, row(params["ff_b2"]),
    ]

    def full_block(a):
        nd = a.ndim
        def imap(b, qi):
            return (0,) * nd
        return pl.BlockSpec(a.shape, imap)

    smem_scalar = pl.BlockSpec(memory_space=pltpu.MemorySpace.SMEM)
    x_spec = pl.BlockSpec((1, N, D), lambda b, qi: (b, 0, 0))     # full sequence (K/V + residual)
    t_spec = pl.BlockSpec((1, TQ, D), lambda b, qi: (b, qi, 0))   # query tile
    o_spec = pl.BlockSpec((1, TQ, D), lambda b, qi: (b, qi, 0))

    in_specs = [smem_scalar, x_spec, t_spec] + [full_block(a) for a in inputs[3:]]

    kernel = functools.partial(ca_block_kernel, num_heads=num_heads,
                               head_dim=head_dim, tq=TQ)

    # causal attention: ~half the N^2 score/PV FLOPs and exps actually execute
    flops = B * (8 * N * D * D + 2 * N * N * D + 4 * N * D * Hm)
    transcendentals = B * (num_heads * N * N // 2 + N * Hm)
    bytes_accessed = (4 * 3 * B * N * D                      # x, t, out (f32)
                      + 2 * (4 * D * D + 2 * D * Hm)         # bf16 weights
                      + 4 * (8 * D + Hm + 1))                # biases / LN params / g_scale

    out = pl.pallas_call(
        kernel,
        out_shape=jax.ShapeDtypeStruct((B, N, D), jnp.float32),
        grid_spec=pltpu.PrefetchScalarGridSpec(
            num_scalar_prefetch=0,
            grid=(B, nq),
            in_specs=in_specs,
            out_specs=o_spec,
            scratch_shapes=[
                pltpu.VMEM((num_heads, N, head_dim), jnp.bfloat16),  # qk-normalized K cache
                pltpu.VMEM((num_heads, N, head_dim), jnp.bfloat16),  # V cache
            ],
        ),
        compiler_params=pltpu.CompilerParams(
            dimension_semantics=("parallel", "arbitrary"),
            vmem_limit_bytes=48 * 1024 * 1024,
        ),
        cost_estimate=pl.CostEstimate(flops=flops, transcendentals=transcendentals,
                                      bytes_accessed=bytes_accessed),
    )(*inputs)

    load_balance = jnp.zeros((1,), dtype=jnp.float32)
    return out, load_balance


# ---------------- pure-JAX reference (for correctness check) ----------------
def reference_block(x, t_embed, params, *, num_heads):
    B, N, D = x.shape
    hd = D // num_heads

    def ln(a, g, b):
        mu = jnp.mean(a, -1, keepdims=True)
        var = jnp.mean((a - mu) ** 2, -1, keepdims=True)
        return (a - mu) / jnp.sqrt(var + LN_EPS) * g + b

    x_norm = ln(x, params["xn_g"], params["xn_b"])
    t_norm = ln(t_embed, params["tn_g"], params["tn_b"])

    q = jnp.einsum("bnd,ed->bne", t_norm, params["wq"])
    k = jnp.einsum("bnd,ed->bne", x_norm, params["wk"])
    v = jnp.einsum("bnd,ed->bne", x_norm, params["wv"])
    q = q.reshape(B, N, num_heads, hd).transpose(0, 2, 1, 3)
    k = k.reshape(B, N, num_heads, hd).transpose(0, 2, 1, 3)
    v = v.reshape(B, N, num_heads, hd).transpose(0, 2, 1, 3)
    q = q / jnp.maximum(jnp.linalg.norm(q, axis=-1, keepdims=True), 1e-12)
    k = k / jnp.maximum(jnp.linalg.norm(k, axis=-1, keepdims=True), 1e-12)
    s = params["g_scale"] * jnp.einsum("bhqd,bhkd->bhqk", q, k)
    causal = jnp.triu(jnp.ones((N, N), dtype=bool), k=1)
    s = jnp.where(causal[None, None], -jnp.inf, s)
    p = jax.nn.softmax(s, axis=-1)
    o = jnp.einsum("bhqk,bhkd->bhqd", p, v)
    o = o.transpose(0, 2, 1, 3).reshape(B, N, D)
    attn = jnp.einsum("bnd,ed->bne", o, params["wc"]) + params["bc"]
    x1 = x + attn
    x1n = ln(x1, params["ln2_g"], params["ln2_b"])
    h = jnp.einsum("bnd,hd->bnh", x1n, params["ff_w1"]) + params["ff_b1"]
    h = jax.nn.gelu(h, approximate=False)
    ff = jnp.einsum("bnh,dh->bnd", h, params["ff_w2"]) + params["ff_b2"]
    return x1 + ff


if __name__ == "__main__":
    B, N, D = 2, 8, 32
    num_heads = 4
    head_dim = D // num_heads
    mlp_scale = 2
    Hm = D * mlp_scale

    key = jax.random.PRNGKey(0)
    ks = jax.random.split(key, 16)

    params = {
        "xn_g": jnp.ones((D,), jnp.float32),
        "xn_b": jnp.zeros((D,), jnp.float32),
        "tn_g": jnp.ones((D,), jnp.float32),
        "tn_b": jnp.zeros((D,), jnp.float32),
        "wq": jax.random.normal(ks[0], (D, D), jnp.float32) * 0.05,
        "wk": jax.random.normal(ks[1], (D, D), jnp.float32) * 0.05,
        "wv": jax.random.normal(ks[2], (D, D), jnp.float32) * 0.05,
        # g_scale initialized as 1.0 / d_k, d_k = head_dim ** -0.5  => sqrt(head_dim)
        "g_scale": jnp.asarray(float(head_dim) ** 0.5, jnp.float32),
        "wc": jax.random.normal(ks[3], (D, D), jnp.float32) * 0.05,
        "bc": jax.random.normal(ks[4], (D,), jnp.float32) * 0.05,
        "ln2_g": jnp.ones((D,), jnp.float32),
        "ln2_b": jnp.zeros((D,), jnp.float32),
        "ff_w1": jax.random.normal(ks[5], (Hm, D), jnp.float32) * 0.05,
        "ff_b1": jax.random.normal(ks[6], (Hm,), jnp.float32) * 0.05,
        "ff_w2": jax.random.normal(ks[7], (D, Hm), jnp.float32) * 0.05,
        "ff_b2": jax.random.normal(ks[8], (D,), jnp.float32) * 0.05,
    }

    x = jax.random.normal(ks[9], (B, N, D), jnp.float32)
    t_embed = jax.random.normal(ks[10], (B, N, D), jnp.float32)

    out, load_balance = ca_transformer_block(x, t_embed, params, num_heads=num_heads)
    out = jax.block_until_ready(out)
    load_balance = jax.block_until_ready(load_balance)

    ref = reference_block(x, t_embed, params, num_heads=num_heads)
    assert out.shape == (B, N, D)
    err = float(jnp.max(jnp.abs(out - ref)))
    # bf16-operand / f32-accumulate matmuls + approx reciprocal in the softmax denominator
    # -> compare at bf16-level tolerance
    assert jnp.allclose(out, ref, atol=2e-2, rtol=2e-2), f"max abs diff {err}"

    print("KERNEL_OK")
</pallas_src>

<mosaic_0001>
module attributes {stable_mosaic.version = 11 : i64} {
  func.func @ca_block_kernel(%arg0: i32, %arg1: i32, %arg2: memref<1xf32, #tpu.memory_space<smem>>, %arg3: memref<1x8x32xf32, #tpu.memory_space<vmem>>, %arg4: memref<1x8x32xf32, #tpu.memory_space<vmem>>, %arg5: memref<1x32xf32, #tpu.memory_space<vmem>>, %arg6: memref<1x32xf32, #tpu.memory_space<vmem>>, %arg7: memref<1x32xf32, #tpu.memory_space<vmem>>, %arg8: memref<1x32xf32, #tpu.memory_space<vmem>>, %arg9: memref<4x32x8xbf16, #tpu.memory_space<vmem>>, %arg10: memref<4x32x8xbf16, #tpu.memory_space<vmem>>, %arg11: memref<4x32x8xbf16, #tpu.memory_space<vmem>>, %arg12: memref<4x8x32xbf16, #tpu.memory_space<vmem>>, %arg13: memref<1x32xf32, #tpu.memory_space<vmem>>, %arg14: memref<1x32xf32, #tpu.memory_space<vmem>>, %arg15: memref<1x32xf32, #tpu.memory_space<vmem>>, %arg16: memref<32x64xbf16, #tpu.memory_space<vmem>>, %arg17: memref<1x64xf32, #tpu.memory_space<vmem>>, %arg18: memref<64x32xbf16, #tpu.memory_space<vmem>>, %arg19: memref<1x32xf32, #tpu.memory_space<vmem>>, %arg20: memref<1x8x32xf32, #tpu.memory_space<vmem>>, %arg21: memref<4x8x8xbf16, #tpu.memory_space<vmem>>, %arg22: memref<4x8x8xbf16, #tpu.memory_space<vmem>>) attributes {dimension_semantics = [#tpu.dimension_semantics<parallel>, #tpu.dimension_semantics<arbitrary>], iteration_bounds = array<i64: 2, 1>, scalar_prefetch = 0 : i64, scratch_operands = 2 : i64, tpu.core_type = #tpu.core_type<tc>, window_params = [{transform_indices = @transform_0, window_bounds = array<i64: 1>}, {transform_indices = @transform_1, window_bounds = array<i64: 1, 8, 32>}, {transform_indices = @transform_2, window_bounds = array<i64: 1, 8, 32>}, {pipeline_mode = #tpu.pipeline_mode<synchronous>, transform_indices = @transform_3, window_bounds = array<i64: 1, 32>}, {pipeline_mode = #tpu.pipeline_mode<synchronous>, transform_indices = @transform_4, window_bounds = array<i64: 1, 32>}, {pipeline_mode = #tpu.pipeline_mode<synchronous>, transform_indices = @transform_5, window_bounds = array<i64: 1, 32>}, {pipeline_mode = #tpu.pipeline_mode<synchronous>, transform_indices = @transform_6, window_bounds = array<i64: 1, 32>}, {pipeline_mode = #tpu.pipeline_mode<synchronous>, transform_indices = @transform_7, window_bounds = array<i64: 4, 32, 8>}, {pipeline_mode = #tpu.pipeline_mode<synchronous>, transform_indices = @transform_8, window_bounds = array<i64: 4, 32, 8>}, {pipeline_mode = #tpu.pipeline_mode<synchronous>, transform_indices = @transform_9, window_bounds = array<i64: 4, 32, 8>}, {pipeline_mode = #tpu.pipeline_mode<synchronous>, transform_indices = @transform_10, window_bounds = array<i64: 4, 8, 32>}, {pipeline_mode = #tpu.pipeline_mode<synchronous>, transform_indices = @transform_11, window_bounds = array<i64: 1, 32>}, {pipeline_mode = #tpu.pipeline_mode<synchronous>, transform_indices = @transform_12, window_bounds = array<i64: 1, 32>}, {pipeline_mode = #tpu.pipeline_mode<synchronous>, transform_indices = @transform_13, window_bounds = array<i64: 1, 32>}, {pipeline_mode = #tpu.pipeline_mode<synchronous>, transform_indices = @transform_14, window_bounds = array<i64: 32, 64>}, {pipeline_mode = #tpu.pipeline_mode<synchronous>, transform_indices = @transform_15, window_bounds = array<i64: 1, 64>}, {pipeline_mode = #tpu.pipeline_mode<synchronous>, transform_indices = @transform_16, window_bounds = array<i64: 64, 32>}, {pipeline_mode = #tpu.pipeline_mode<synchronous>, transform_indices = @transform_17, window_bounds = array<i64: 1, 32>}, {transform_indices = @transform_18, window_bounds = array<i64: 1, 8, 32>}]} {
    %c0_i32 = arith.constant 0 : i32
    %0 = arith.cmpi eq, %arg1, %c0_i32 : i32
    %1 = arith.extui %0 : i1 to i32
    %c0_i32_0 = arith.constant 0 : i32
    %2 = arith.cmpi ne, %1, %c0_i32_0 : i32
    scf.if %2 {
      %c0_46 = arith.constant 0 : index
      %c0_47 = arith.constant 0 : index
      %c0_48 = arith.constant 0 : index
      %98 = vector.load %arg3[%c0_46, %c0_47, %c0_48] : memref<1x8x32xf32, #tpu.memory_space<vmem>>, vector<1x8x32xf32>
      %99 = vector.shape_cast %98 : vector<1x8x32xf32> to vector<8x32xf32>
      %c0_49 = arith.constant 0 : index
      %c0_50 = arith.constant 0 : index
      %100 = vector.load %arg5[%c0_49, %c0_50] : memref<1x32xf32, #tpu.memory_space<vmem>>, vector<1x32xf32>
      %c0_51 = arith.constant 0 : index
      %c0_52 = arith.constant 0 : index
      %101 = vector.load %arg6[%c0_51, %c0_52] : memref<1x32xf32, #tpu.memory_space<vmem>>, vector<1x32xf32>
      %cst_53 = arith.constant dense<0.000000e+00> : vector<8xf32>
      %102 = vector.multi_reduction <add>, %99, %cst_53 [1] : vector<8x32xf32> to vector<8xf32>
      %103 = vector.shape_cast %102 : vector<8xf32> to vector<8x1xf32>
      %cst_54 = arith.constant 3.200000e+01 : f32
      %104 = vector.broadcast %cst_54 : f32 to vector<8x1xf32>
      %105 = arith.divf %103, %104 : vector<8x1xf32>
      %106 = vector.broadcast %105 : vector<8x1xf32> to vector<8x32xf32>
      %107 = arith.subf %99, %106 : vector<8x32xf32>
      %108 = arith.mulf %107, %107 : vector<8x32xf32>
      %cst_55 = arith.constant dense<0.000000e+00> : vector<8xf32>
      %109 = vector.multi_reduction <add>, %108, %cst_55 [1] : vector<8x32xf32> to vector<8xf32>
      %110 = vector.shape_cast %109 : vector<8xf32> to vector<8x1xf32>
      %cst_56 = arith.constant 3.200000e+01 : f32
      %111 = vector.broadcast %cst_56 : f32 to vector<8x1xf32>
      %112 = arith.divf %110, %111 : vector<8x1xf32>
      %113 = vector.broadcast %105 : vector<8x1xf32> to vector<8x32xf32>
      %114 = arith.subf %99, %113 : vector<8x32xf32>
      %cst_57 = arith.constant 9.99999974E-6 : f32
      %115 = vector.broadcast %cst_57 : f32 to vector<8x1xf32>
      %116 = arith.addf %112, %115 : vector<8x1xf32>
      %117 = math.rsqrt %116 : vector<8x1xf32>
      %118 = vector.broadcast %117 : vector<8x1xf32> to vector<8x32xf32>
      %119 = arith.mulf %114, %118 : vector<8x32xf32>
      %120 = vector.broadcast %100 : vector<1x32xf32> to vector<8x32xf32>
      %121 = arith.mulf %119, %120 : vector<8x32xf32>
      %122 = vector.broadcast %101 : vector<1x32xf32> to vector<8x32xf32>
      %123 = arith.addf %121, %122 : vector<8x32xf32>
      %124 = arith.truncf %123 : vector<8x32xf32> to vector<8x32xbf16>
      %c0_i32_58 = arith.constant 0 : i32
      %c4_i32_59 = arith.constant 4 : i32
      %125 = arith.addi %c0_i32_58, %c4_i32_59 : i32
      %c1_i32_60 = arith.constant 1 : i32
      scf.for %arg23 = %c0_i32_58 to %125 step %c1_i32_60  : i32 {
        %126 = arith.index_cast %arg23 : i32 to index
        %c0_62 = arith.constant 0 : index
        %c0_63 = arith.constant 0 : index
        %127 = vector.load %arg10[%126, %c0_62, %c0_63] : memref<4x32x8xbf16, #tpu.memory_space<vmem>>, vector<1x32x8xbf16>
        %128 = vector.shape_cast %127 : vector<1x32x8xbf16> to vector<32x8xbf16>
        %cst_64 = arith.constant dense<0.000000e+00> : vector<8x8xf32>
        %129 = tpu.matmul %124, %128, %cst_64 {dimension_numbers = #tpu.dot_dimension_numbers<[1], [0], [0], [1], [0, 0, 1, 1], [], []>} : vector<8x32xbf16>, vector<32x8xbf16>, vector<8x8xf32> -> vector<8x8xf32>
        %130 = arith.index_cast %arg23 : i32 to index
        %c0_65 = arith.constant 0 : index
        %c0_66 = arith.constant 0 : index
        %131 = vector.load %arg11[%130, %c0_65, %c0_66] : memref<4x32x8xbf16, #tpu.memory_space<vmem>>, vector<1x32x8xbf16>
        %132 = vector.shape_cast %131 : vector<1x32x8xbf16> to vector<32x8xbf16>
        %cst_67 = arith.constant dense<0.000000e+00> : vector<8x8xf32>
        %133 = tpu.matmul %124, %132, %cst_67 {dimension_numbers = #tpu.dot_dimension_numbers<[1], [0], [0], [1], [0, 0, 1, 1], [], []>} : vector<8x32xbf16>, vector<32x8xbf16>, vector<8x8xf32> -> vector<8x8xf32>
        %134 = arith.mulf %129, %129 : vector<8x8xf32>
        %cst_68 = arith.constant dense<0.000000e+00> : vector<8xf32>
        %135 = vector.multi_reduction <add>, %134, %cst_68 [1] : vector<8x8xf32> to vector<8xf32>
        %136 = vector.shape_cast %135 : vector<8xf32> to vector<8x1xf32>
        %cst_69 = arith.constant 1.000000e-24 : f32
        %137 = vector.broadcast %cst_69 : f32 to vector<8x1xf32>
        %138 = arith.maximumf %136, %137 : vector<8x1xf32>
        %139 = math.rsqrt %138 : vector<8x1xf32>
        %140 = vector.broadcast %139 : vector<8x1xf32> to vector<8x8xf32>
        %141 = arith.mulf %129, %140 : vector<8x8xf32>
        %142 = arith.truncf %141 : vector<8x8xf32> to vector<8x8xbf16>
        %143 = arith.index_cast %arg23 : i32 to index
        %c0_70 = arith.constant 0 : index
        %c0_71 = arith.constant 0 : index
        %144 = vector.load %arg21[%143, %c0_70, %c0_71] : memref<4x8x8xbf16, #tpu.memory_space<vmem>>, vector<1x8x8xbf16>
        %145 = vector.shape_cast %144 : vector<1x8x8xbf16> to vector<8x8xbf16>
        %146 = vector.shape_cast %142 : vector<8x8xbf16> to vector<1x8x8xbf16>
        tpu.vector_store %arg21[%143, %c0_70, %c0_71], %146 {strides = array<i32>} : memref<4x8x8xbf16, #tpu.memory_space<vmem>>, vector<1x8x8xbf16>,
        %147 = arith.truncf %133 : vector<8x8xf32> to vector<8x8xbf16>
        %148 = arith.index_cast %arg23 : i32 to index
        %c0_72 = arith.constant 0 : index
        %c0_73 = arith.constant 0 : index
        %149 = vector.load %arg22[%148, %c0_72, %c0_73] : memref<4x8x8xbf16, #tpu.memory_space<vmem>>, vector<1x8x8xbf16>
        %150 = vector.shape_cast %149 : vector<1x8x8xbf16> to vector<8x8xbf16>
        %151 = vector.shape_cast %147 : vector<8x8xbf16> to vector<1x8x8xbf16>
        tpu.vector_store %arg22[%148, %c0_72, %c0_73], %151 {strides = array<i32>} : memref<4x8x8xbf16, #tpu.memory_space<vmem>>, vector<1x8x8xbf16>,
      }
      %c4_i32_61 = arith.constant 4 : i32
    } else {
    }
    %c0 = arith.constant 0 : index
    %3 = memref.load %arg2[%c0] : memref<1xf32, #tpu.memory_space<smem>>
    %4 = math.absf %3 : f32
    %c0_1 = arith.constant 0 : index
    %c0_2 = arith.constant 0 : index
    %c0_3 = arith.constant 0 : index
    %5 = vector.load %arg4[%c0_1, %c0_2, %c0_3] : memref<1x8x32xf32, #tpu.memory_space<vmem>>, vector<1x8x32xf32>
    %6 = vector.shape_cast %5 : vector<1x8x32xf32> to vector<8x32xf32>
    %c0_4 = arith.constant 0 : index
    %c0_5 = arith.constant 0 : index
    %7 = vector.load %arg7[%c0_4, %c0_5] : memref<1x32xf32, #tpu.memory_space<vmem>>, vector<1x32xf32>
    %c0_6 = arith.constant 0 : index
    %c0_7 = arith.constant 0 : index
    %8 = vector.load %arg8[%c0_6, %c0_7] : memref<1x32xf32, #tpu.memory_space<vmem>>, vector<1x32xf32>
    %cst = arith.constant dense<0.000000e+00> : vector<8xf32>
    %9 = vector.multi_reduction <add>, %6, %cst [1] : vector<8x32xf32> to vector<8xf32>
    %10 = vector.shape_cast %9 : vector<8xf32> to vector<8x1xf32>
    %cst_8 = arith.constant 3.200000e+01 : f32
    %11 = vector.broadcast %cst_8 : f32 to vector<8x1xf32>
    %12 = arith.divf %10, %11 : vector<8x1xf32>
    %13 = vector.broadcast %12 : vector<8x1xf32> to vector<8x32xf32>
    %14 = arith.subf %6, %13 : vector<8x32xf32>
    %15 = arith.mulf %14, %14 : vector<8x32xf32>
    %cst_9 = arith.constant dense<0.000000e+00> : vector<8xf32>
    %16 = vector.multi_reduction <add>, %15, %cst_9 [1] : vector<8x32xf32> to vector<8xf32>
    %17 = vector.shape_cast %16 : vector<8xf32> to vector<8x1xf32>
    %cst_10 = arith.constant 3.200000e+01 : f32
    %18 = vector.broadcast %cst_10 : f32 to vector<8x1xf32>
    %19 = arith.divf %17, %18 : vector<8x1xf32>
    %20 = vector.broadcast %12 : vector<8x1xf32> to vector<8x32xf32>
    %21 = arith.subf %6, %20 : vector<8x32xf32>
    %cst_11 = arith.constant 9.99999974E-6 : f32
    %22 = vector.broadcast %cst_11 : f32 to vector<8x1xf32>
    %23 = arith.addf %19, %22 : vector<8x1xf32>
    %24 = math.rsqrt %23 : vector<8x1xf32>
    %25 = vector.broadcast %24 : vector<8x1xf32> to vector<8x32xf32>
    %26 = arith.mulf %21, %25 : vector<8x32xf32>
    %27 = vector.broadcast %7 : vector<1x32xf32> to vector<8x32xf32>
    %28 = arith.mulf %26, %27 : vector<8x32xf32>
    %29 = vector.broadcast %8 : vector<1x32xf32> to vector<8x32xf32>
    %30 = arith.addf %28, %29 : vector<8x32xf32>
    %31 = arith.truncf %30 : vector<8x32xf32> to vector<8x32xbf16>
    %32 = tpu.iota {dimensions = array<i32: 0>} : vector<8x8xi32>
    %33 = tpu.iota {dimensions = array<i32: 1>} : vector<8x8xi32>
    %34 = arith.cmpi sgt, %33, %32 : vector<8x8xi32>
    %cst_12 = arith.constant -1.000000e+30 : f32
    %cst_13 = arith.constant 0.000000e+00 : f32
    %35 = vector.broadcast %cst_12 : f32 to vector<8x8xf32>
    %36 = vector.broadcast %cst_13 : f32 to vector<8x8xf32>
    %37 = arith.select %34, %35, %36 : vector<8x8xi1>, vector<8x8xf32>
    %c8_i32 = arith.constant 8 : i32
    %38 = arith.muli %arg1, %c8_i32 : i32
    %39 = tpu.assume_multiple %38, 8 : i32
    %cst_14 = arith.constant 0.000000e+00 : f32
    %40 = vector.broadcast %cst_14 : f32 to vector<8x32xf32>
    %c0_i32_15 = arith.constant 0 : i32
    %c4_i32 = arith.constant 4 : i32
    %41 = arith.addi %c0_i32_15, %c4_i32 : i32
    %c1_i32 = arith.constant 1 : i32
    %42 = scf.for %arg23 = %c0_i32_15 to %41 step %c1_i32 iter_args(%arg24 = %40) -> (vector<8x32xf32>)  : i32 {
      %98 = arith.index_cast %arg23 : i32 to index
      %c0_46 = arith.constant 0 : index
      %c0_47 = arith.constant 0 : index
      %99 = vector.load %arg9[%98, %c0_46, %c0_47] : memref<4x32x8xbf16, #tpu.memory_space<vmem>>, vector<1x32x8xbf16>
      %100 = vector.shape_cast %99 : vector<1x32x8xbf16> to vector<32x8xbf16>
      %cst_48 = arith.constant dense<0.000000e+00> : vector<8x8xf32>
      %101 = tpu.matmul %31, %100, %cst_48 {dimension_numbers = #tpu.dot_dimension_numbers<[1], [0], [0], [1], [0, 0, 1, 1], [], []>} : vector<8x32xbf16>, vector<32x8xbf16>, vector<8x8xf32> -> vector<8x8xf32>
      %102 = arith.mulf %101, %101 : vector<8x8xf32>
      %cst_49 = arith.constant dense<0.000000e+00> : vector<8xf32>
      %103 = vector.multi_reduction <add>, %102, %cst_49 [1] : vector<8x8xf32> to vector<8xf32>
      %104 = vector.shape_cast %103 : vector<8xf32> to vector<8x1xf32>
      %cst_50 = arith.constant 1.000000e-24 : f32
      %105 = vector.broadcast %cst_50 : f32 to vector<8x1xf32>
      %106 = arith.maximumf %104, %105 : vector<8x1xf32>
      %107 = math.rsqrt %106 : vector<8x1xf32>
      %108 = vector.broadcast %107 : vector<8x1xf32> to vector<8x8xf32>
      %109 = arith.mulf %101, %108 : vector<8x8xf32>
      %110 = vector.broadcast %3 : f32 to vector<8x8xf32>
      %111 = arith.mulf %109, %110 : vector<8x8xf32>
      %112 = arith.truncf %111 : vector<8x8xf32> to vector<8x8xbf16>
      %cst_51 = arith.constant 0.000000e+00 : f32
      %113 = vector.broadcast %cst_51 : f32 to vector<8x8xf32>
      %cst_52 = arith.constant 0.000000e+00 : f32
      %114 = vector.broadcast %cst_52 : f32 to vector<8x1xf32>
      %c0_i32_53 = arith.constant 0 : i32
      %115 = arith.subi %arg1, %c0_i32_53 : i32
      %116 = arith.addi %c0_i32_53, %115 : i32
      %c1_i32_54 = arith.constant 1 : i32
      %117:2 = scf.for %arg25 = %c0_i32_53 to %116 step %c1_i32_54 iter_args(%arg26 = %113, %arg27 = %114) -> (vector<8x8xf32>, vector<8x1xf32>)  : i32 {
        %c8_i32_63 = arith.constant 8 : i32
        %146 = arith.muli %arg25, %c8_i32_63 : i32
        %147 = tpu.assume_multiple %146, 8 : i32
        %148 = arith.index_cast %arg23 : i32 to index
        %149 = arith.index_cast %147 : i32 to index
        %c0_64 = arith.constant 0 : index
        %150 = vector.load %arg21[%148, %149, %c0_64] : memref<4x8x8xbf16, #tpu.memory_space<vmem>>, vector<1x8x8xbf16>
        %151 = vector.shape_cast %150 : vector<1x8x8xbf16> to vector<8x8xbf16>
        %152 = arith.index_cast %arg23 : i32 to index
        %153 = arith.index_cast %147 : i32 to index
        %c0_65 = arith.constant 0 : index
        %154 = vector.load %arg22[%152, %153, %c0_65] : memref<4x8x8xbf16, #tpu.memory_space<vmem>>, vector<1x8x8xbf16>
        %155 = vector.shape_cast %154 : vector<1x8x8xbf16> to vector<8x8xbf16>
        %cst_66 = arith.constant dense<0.000000e+00> : vector<8x8xf32>
        %156 = tpu.matmul %112, %151, %cst_66 {dimension_numbers = #tpu.dot_dimension_numbers<[1], [1], [0], [0], [0, 0, 1, 0], [], []>} : vector<8x8xbf16>, vector<8x8xbf16>, vector<8x8xf32> -> vector<8x8xf32>
        %157 = vector.broadcast %4 : f32 to vector<8x8xf32>
        %158 = arith.subf %156, %157 : vector<8x8xf32>
        %159 = math.exp %158 : vector<8x8xf32>
        %cst_67 = arith.constant dense<0.000000e+00> : vector<8xf32>
        %160 = vector.multi_reduction <add>, %159, %cst_67 [1] : vector<8x8xf32> to vector<8xf32>
        %161 = vector.shape_cast %160 : vector<8xf32> to vector<8x1xf32>
        %162 = arith.addf %arg27, %161 : vector<8x1xf32>
        %163 = arith.truncf %159 : vector<8x8xf32> to vector<8x8xbf16>
        %cst_68 = arith.constant dense<0.000000e+00> : vector<8x8xf32>
        %164 = tpu.matmul %163, %155, %cst_68 {dimension_numbers = #tpu.dot_dimension_numbers<[1], [0], [0], [1], [0, 0, 1, 1], [], []>} : vector<8x8xbf16>, vector<8x8xbf16>, vector<8x8xf32> -> vector<8x8xf32>
        %165 = arith.addf %arg26, %164 : vector<8x8xf32>
        scf.yield %165, %162 : vector<8x8xf32>, vector<8x1xf32>
      }
      %118 = arith.index_cast %arg23 : i32 to index
      %119 = arith.index_cast %39 : i32 to index
      %c0_55 = arith.constant 0 : index
      %120 = vector.load %arg21[%118, %119, %c0_55] : memref<4x8x8xbf16, #tpu.memory_space<vmem>>, vector<1x8x8xbf16>
      %121 = vector.shape_cast %120 : vector<1x8x8xbf16> to vector<8x8xbf16>
      %122 = arith.index_cast %arg23 : i32 to index
      %123 = arith.index_cast %39 : i32 to index
      %c0_56 = arith.constant 0 : index
      %124 = vector.load %arg22[%122, %123, %c0_56] : memref<4x8x8xbf16, #tpu.memory_space<vmem>>, vector<1x8x8xbf16>
      %125 = vector.shape_cast %124 : vector<1x8x8xbf16> to vector<8x8xbf16>
      %cst_57 = arith.constant dense<0.000000e+00> : vector<8x8xf32>
      %126 = tpu.matmul %112, %121, %cst_57 {dimension_numbers = #tpu.dot_dimension_numbers<[1], [1], [0], [0], [0, 0, 1, 0], [], []>} : vector<8x8xbf16>, vector<8x8xbf16>, vector<8x8xf32> -> vector<8x8xf32>
      %127 = vector.broadcast %4 : f32 to vector<8x8xf32>
      %128 = arith.subf %126, %127 : vector<8x8xf32>
      %129 = arith.addf %128, %37 : vector<8x8xf32>
      %130 = math.exp %129 : vector<8x8xf32>
      %cst_58 = arith.constant dense<0.000000e+00> : vector<8xf32>
      %131 = vector.multi_reduction <add>, %130, %cst_58 [1] : vector<8x8xf32> to vector<8xf32>
      %132 = vector.shape_cast %131 : vector<8xf32> to vector<8x1xf32>
      %133 = arith.addf %117#1, %132 : vector<8x1xf32>
      %134 = arith.truncf %130 : vector<8x8xf32> to vector<8x8xbf16>
      %cst_59 = arith.constant dense<0.000000e+00> : vector<8x8xf32>
      %135 = tpu.matmul %134, %125, %cst_59 {dimension_numbers = #tpu.dot_dimension_numbers<[1], [0], [0], [1], [0, 0, 1, 1], [], []>} : vector<8x8xbf16>, vector<8x8xbf16>, vector<8x8xf32> -> vector<8x8xf32>
      %136 = arith.addf %117#0, %135 : vector<8x8xf32>
      %137 = tpu.reciprocal %133 {approx = true} : vector<8x1xf32> -> vector<8x1xf32>
      %138 = vector.broadcast %137 : vector<8x1xf32> to vector<8x8xf32>
      %139 = arith.mulf %136, %138 : vector<8x8xf32>
      %140 = arith.truncf %139 : vector<8x8xf32> to vector<8x8xbf16>
      %141 = arith.index_cast %arg23 : i32 to index
      %c0_60 = arith.constant 0 : index
      %c0_61 = arith.constant 0 : index
      %142 = vector.load %arg12[%141, %c0_60, %c0_61] : memref<4x8x32xbf16, #tpu.memory_space<vmem>>, vector<1x8x32xbf16>
      %143 = vector.shape_cast %142 : vector<1x8x32xbf16> to vector<8x32xbf16>
      %cst_62 = arith.constant dense<0.000000e+00> : vector<8x32xf32>
      %144 = tpu.matmul %140, %143, %cst_62 {dimension_numbers = #tpu.dot_dimension_numbers<[1], [0], [0], [1], [0, 0, 1, 1], [], []>} : vector<8x8xbf16>, vector<8x32xbf16>, vector<8x32xf32> -> vector<8x32xf32>
      %145 = arith.addf %arg24, %144 : vector<8x32xf32>
      scf.yield %145 : vector<8x32xf32>
    }
    %c4_i32_16 = arith.constant 4 : i32
    %c0_17 = arith.constant 0 : index
    %43 = arith.index_cast %39 : i32 to index
    %c0_18 = arith.constant 0 : index
    %44 = vector.load %arg3[%c0_17, %43, %c0_18] : memref<1x8x32xf32, #tpu.memory_space<vmem>>, vector<1x8x32xf32>
    %45 = vector.shape_cast %44 : vector<1x8x32xf32> to vector<8x32xf32>
    %46 = arith.addf %45, %42 : vector<8x32xf32>
    %c0_19 = arith.constant 0 : index
    %c0_20 = arith.constant 0 : index
    %47 = vector.load %arg13[%c0_19, %c0_20] : memref<1x32xf32, #tpu.memory_space<vmem>>, vector<1x32xf32>
    %48 = vector.broadcast %47 : vector<1x32xf32> to vector<8x32xf32>
    %49 = arith.addf %46, %48 : vector<8x32xf32>
    %c0_21 = arith.constant 0 : index
    %c0_22 = arith.constant 0 : index
    %50 = vector.load %arg14[%c0_21, %c0_22] : memref<1x32xf32, #tpu.memory_space<vmem>>, vector<1x32xf32>
    %c0_23 = arith.constant 0 : index
    %c0_24 = arith.constant 0 : index
    %51 = vector.load %arg15[%c0_23, %c0_24] : memref<1x32xf32, #tpu.memory_space<vmem>>, vector<1x32xf32>
    %cst_25 = arith.constant dense<0.000000e+00> : vector<8xf32>
    %52 = vector.multi_reduction <add>, %49, %cst_25 [1] : vector<8x32xf32> to vector<8xf32>
    %53 = vector.shape_cast %52 : vector<8xf32> to vector<8x1xf32>
    %cst_26 = arith.constant 3.200000e+01 : f32
    %54 = vector.broadcast %cst_26 : f32 to vector<8x1xf32>
    %55 = arith.divf %53, %54 : vector<8x1xf32>
    %56 = vector.broadcast %55 : vector<8x1xf32> to vector<8x32xf32>
    %57 = arith.subf %49, %56 : vector<8x32xf32>
    %58 = arith.mulf %57, %57 : vector<8x32xf32>
    %cst_27 = arith.constant dense<0.000000e+00> : vector<8xf32>
    %59 = vector.multi_reduction <add>, %58, %cst_27 [1] : vector<8x32xf32> to vector<8xf32>
    %60 = vector.shape_cast %59 : vector<8xf32> to vector<8x1xf32>
    %cst_28 = arith.constant 3.200000e+01 : f32
    %61 = vector.broadcast %cst_28 : f32 to vector<8x1xf32>
    %62 = arith.divf %60, %61 : vector<8x1xf32>
    %63 = vector.broadcast %55 : vector<8x1xf32> to vector<8x32xf32>
    %64 = arith.subf %49, %63 : vector<8x32xf32>
    %cst_29 = arith.constant 9.99999974E-6 : f32
    %65 = vector.broadcast %cst_29 : f32 to vector<8x1xf32>
    %66 = arith.addf %62, %65 : vector<8x1xf32>
    %67 = math.rsqrt %66 : vector<8x1xf32>
    %68 = vector.broadcast %67 : vector<8x1xf32> to vector<8x32xf32>
    %69 = arith.mulf %64, %68 : vector<8x32xf32>
    %70 = vector.broadcast %50 : vector<1x32xf32> to vector<8x32xf32>
    %71 = arith.mulf %69, %70 : vector<8x32xf32>
    %72 = vector.broadcast %51 : vector<1x32xf32> to vector<8x32xf32>
    %73 = arith.addf %71, %72 : vector<8x32xf32>
    %74 = arith.truncf %73 : vector<8x32xf32> to vector<8x32xbf16>
    %c0_30 = arith.constant 0 : index
    %c0_31 = arith.constant 0 : index
    %75 = vector.load %arg16[%c0_30, %c0_31] : memref<32x64xbf16, #tpu.memory_space<vmem>>, vector<32x64xbf16>
    %cst_32 = arith.constant dense<0.000000e+00> : vector<8x64xf32>
    %76 = tpu.matmul %74, %75, %cst_32 {dimension_numbers = #tpu.dot_dimension_numbers<[1], [0], [0], [1], [0, 0, 1, 1], [], []>} : vector<8x32xbf16>, vector<32x64xbf16>, vector<8x64xf32> -> vector<8x64xf32>
    %c0_33 = arith.constant 0 : index
    %c0_34 = arith.constant 0 : index
    %77 = vector.load %arg17[%c0_33, %c0_34] : memref<1x64xf32, #tpu.memory_space<vmem>>, vector<1x64xf32>
    %78 = vector.broadcast %77 : vector<1x64xf32> to vector<8x64xf32>
    %79 = arith.addf %76, %78 : vector<8x64xf32>
    %cst_35 = arith.constant 5.000000e-01 : f32
    %80 = vector.broadcast %cst_35 : f32 to vector<8x64xf32>
    %81 = arith.mulf %80, %79 : vector<8x64xf32>
    %cst_36 = arith.constant 0.707106769 : f32
    %82 = vector.broadcast %cst_36 : f32 to vector<8x64xf32>
    %83 = arith.mulf %79, %82 : vector<8x64xf32>
    %84 = math.erf %83 : vector<8x64xf32>
    %cst_37 = arith.constant 1.000000e+00 : f32
    %85 = vector.broadcast %cst_37 : f32 to vector<8x64xf32>
    %86 = arith.addf %85, %84 : vector<8x64xf32>
    %87 = arith.mulf %81, %86 : vector<8x64xf32>
    %88 = arith.truncf %87 : vector<8x64xf32> to vector<8x64xbf16>
    %c0_38 = arith.constant 0 : index
    %c0_39 = arith.constant 0 : index
    %89 = vector.load %arg18[%c0_38, %c0_39] : memref<64x32xbf16, #tpu.memory_space<vmem>>, vector<64x32xbf16>
    %cst_40 = arith.constant dense<0.000000e+00> : vector<8x32xf32>
    %90 = tpu.matmul %88, %89, %cst_40 {dimension_numbers = #tpu.dot_dimension_numbers<[1], [0], [0], [1], [0, 0, 1, 1], [], []>} : vector<8x64xbf16>, vector<64x32xbf16>, vector<8x32xf32> -> vector<8x32xf32>
    %c0_41 = arith.constant 0 : index
    %c0_42 = arith.constant 0 : index
    %91 = vector.load %arg19[%c0_41, %c0_42] : memref<1x32xf32, #tpu.memory_space<vmem>>, vector<1x32xf32>
    %92 = vector.broadcast %91 : vector<1x32xf32> to vector<8x32xf32>
    %93 = arith.addf %90, %92 : vector<8x32xf32>
    %94 = arith.addf %49, %93 : vector<8x32xf32>
    %c0_43 = arith.constant 0 : index
    %c0_44 = arith.constant 0 : index
    %c0_45 = arith.constant 0 : index
    %95 = vector.load %arg20[%c0_43, %c0_44, %c0_45] : memref<1x8x32xf32, #tpu.memory_space<vmem>>, vector<1x8x32xf32>
    %96 = vector.shape_cast %95 : vector<1x8x32xf32> to vector<8x32xf32>
    %97 = vector.shape_cast %94 : vector<8x32xf32> to vector<1x8x32xf32>
    tpu.vector_store %arg20[%c0_43, %c0_44, %c0_45], %97 {strides = array<i32>} : memref<1x8x32xf32, #tpu.memory_space<vmem>>, vector<1x8x32xf32>,
    return
  }
  func.func @transform_0(%arg0: i32, %arg1: i32) -> i32 {
    %c0_i32 = arith.constant 0 : i32
    %c0_i32_0 = arith.constant 0 : i32
    return %c0_i32 : i32
  }
  func.func @transform_1(%arg0: i32, %arg1: i32) -> (i32, i32, i32) {
    %c0_i32 = arith.constant 0 : i32
    %c0_i32_0 = arith.constant 0 : i32
    %c0_i32_1 = arith.constant 0 : i32
    return %arg0, %c0_i32, %c0_i32_0 : i32, i32, i32
  }
  func.func @transform_2(%arg0: i32, %arg1: i32) -> (i32, i32, i32) {
    %c0_i32 = arith.constant 0 : i32
    %c0_i32_0 = arith.constant 0 : i32
    return %arg0, %arg1, %c0_i32 : i32, i32, i32
  }
  func.func @transform_3(%arg0: i32, %arg1: i32) -> (i32, i32) {
    %c0_i32 = arith.constant 0 : i32
    %c0_i32_0 = arith.constant 0 : i32
    %c0_i32_1 = arith.constant 0 : i32
    return %c0_i32, %c0_i32_0 : i32, i32
  }
  func.func @transform_4(%arg0: i32, %arg1: i32) -> (i32, i32) {
    %c0_i32 = arith.constant 0 : i32
    %c0_i32_0 = arith.constant 0 : i32
    %c0_i32_1 = arith.constant 0 : i32
    return %c0_i32, %c0_i32_0 : i32, i32
  }
  func.func @transform_5(%arg0: i32, %arg1: i32) -> (i32, i32) {
    %c0_i32 = arith.constant 0 : i32
    %c0_i32_0 = arith.constant 0 : i32
    %c0_i32_1 = arith.constant 0 : i32
    return %c0_i32, %c0_i32_0 : i32, i32
  }
  func.func @transform_6(%arg0: i32, %arg1: i32) -> (i32, i32) {
    %c0_i32 = arith.constant 0 : i32
    %c0_i32_0 = arith.constant 0 : i32
    %c0_i32_1 = arith.constant 0 : i32
    return %c0_i32, %c0_i32_0 : i32, i32
  }
  func.func @transform_7(%arg0: i32, %arg1: i32) -> (i32, i32, i32) {
    %c0_i32 = arith.constant 0 : i32
    %c0_i32_0 = arith.constant 0 : i32
    %c0_i32_1 = arith.constant 0 : i32
    %c0_i32_2 = arith.constant 0 : i32
    return %c0_i32, %c0_i32_0, %c0_i32_1 : i32, i32, i32
  }
  func.func @transform_8(%arg0: i32, %arg1: i32) -> (i32, i32, i32) {
    %c0_i32 = arith.constant 0 : i32
    %c0_i32_0 = arith.constant 0 : i32
    %c0_i32_1 = arith.constant 0 : i32
    %c0_i32_2 = arith.constant 0 : i32
    return %c0_i32, %c0_i32_0, %c0_i32_1 : i32, i32, i32
  }
  func.func @transform_9(%arg0: i32, %arg1: i32) -> (i32, i32, i32) {
    %c0_i32 = arith.constant 0 : i32
    %c0_i32_0 = arith.constant 0 : i32
    %c0_i32_1 = arith.constant 0 : i32
    %c0_i32_2 = arith.constant 0 : i32
    return %c0_i32, %c0_i32_0, %c0_i32_1 : i32, i32, i32
  }
  func.func @transform_10(%arg0: i32, %arg1: i32) -> (i32, i32, i32) {
    %c0_i32 = arith.constant 0 : i32
    %c0_i32_0 = arith.constant 0 : i32
    %c0_i32_1 = arith.constant 0 : i32
    %c0_i32_2 = arith.constant 0 : i32
    return %c0_i32, %c0_i32_0, %c0_i32_1 : i32, i32, i32
  }
  func.func @transform_11(%arg0: i32, %arg1: i32) -> (i32, i32) {
    %c0_i32 = arith.constant 0 : i32
    %c0_i32_0 = arith.constant 0 : i32
    %c0_i32_1 = arith.constant 0 : i32
    return %c0_i32, %c0_i32_0 : i32, i32
  }
  func.func @transform_12(%arg0: i32, %arg1: i32) -> (i32, i32) {
    %c0_i32 = arith.constant 0 : i32
    %c0_i32_0 = arith.constant 0 : i32
    %c0_i32_1 = arith.constant 0 : i32
    return %c0_i32, %c0_i32_0 : i32, i32
  }
  func.func @transform_13(%arg0: i32, %arg1: i32) -> (i32, i32) {
    %c0_i32 = arith.constant 0 : i32
    %c0_i32_0 = arith.constant 0 : i32
    %c0_i32_1 = arith.constant 0 : i32
    return %c0_i32, %c0_i32_0 : i32, i32
  }
  func.func @transform_14(%arg0: i32, %arg1: i32) -> (i32, i32) {
    %c0_i32 = arith.constant 0 : i32
    %c0_i32_0 = arith.constant 0 : i32
    %c0_i32_1 = arith.constant 0 : i32
    return %c0_i32, %c0_i32_0 : i32, i32
  }
  func.func @transform_15(%arg0: i32, %arg1: i32) -> (i32, i32) {
    %c0_i32 = arith.constant 0 : i32
    %c0_i32_0 = arith.constant 0 : i32
    %c0_i32_1 = arith.constant 0 : i32
    return %c0_i32, %c0_i32_0 : i32, i32
  }
  func.func @transform_16(%arg0: i32, %arg1: i32) -> (i32, i32) {
    %c0_i32 = arith.constant 0 : i32
    %c0_i32_0 = arith.constant 0 : i32
    %c0_i32_1 = arith.constant 0 : i32
    return %c0_i32, %c0_i32_0 : i32, i32
  }
  func.func @transform_17(%arg0: i32, %arg1: i32) -> (i32, i32) {
    %c0_i32 = arith.constant 0 : i32
    %c0_i32_0 = arith.constant 0 : i32
    %c0_i32_1 = arith.constant 0 : i32
    return %c0_i32, %c0_i32_0 : i32, i32
  }
  func.func @transform_18(%arg0: i32, %arg1: i32) -> (i32, i32, i32) {
    %c0_i32 = arith.constant 0 : i32
    %c0_i32_0 = arith.constant 0 : i32
    return %arg0, %arg1, %c0_i32 : i32, i32, i32
  }
}

</mosaic_0001>

<bundles_post_ra>
// kernel: tpu_custom_call.1
= control target key start
LH: loop header
LB: loop body
LE: loop exit
PB: predicated region body
PF: predicated region fallthrough
CT: control target
= control target key end

     0   :  { %s2288_s0 = inlined_call_operand.<no memory space> [shape: f32[1], index: 0, kind: input, shape index: {}]   ;;  %s2289_s1 = inlined_call_operand.vmem [shape: f32[2,8,32], index: 1, kind: input, shape index: {}]   ;;  %s2290_s2 = inlined_call_operand.vmem [shape: f32[2,8,32], index: 2, kind: input, shape index: {}]   ;;  %s2291_s3 = inlined_call_operand.vmem [shape: f32[1,32], index: 3, kind: input, shape index: {}]   ;;  %s2292_s4 = inlined_call_operand.vmem [shape: f32[1,32], index: 4, kind: input, shape index: {}]   ;;  %s2293_s5 = inlined_call_operand.vmem [shape: f32[1,32], index: 5, kind: input, shape index: {}]   ;;  %s2294_s6 = inlined_call_operand.vmem [shape: f32[1,32], index: 6, kind: input, shape index: {}]   ;;  %s2295_s7 = inlined_call_operand.vmem [shape: bf16[4,32,8], index: 7, kind: input, shape index: {}]   ;;  %s2296_s8 = inlined_call_operand.vmem [shape: bf16[4,32,8], index: 8, kind: input, shape index: {}]   ;;  %s2297_s9 = inlined_call_operand.vmem [shape: bf16[4,32,8], index: 9, kind: input, shape index: {}]   ;;  %s2298_s10 = inlined_call_operand.vmem [shape: bf16[4,8,32], index: 10, kind: input, shape index: {}]   ;;  %s2299_s11 = inlined_call_operand.vmem [shape: f32[1,32], index: 11, kind: input, shape index: {}]   ;;  %s2300_s12 = inlined_call_operand.vmem [shape: f32[1,32], index: 12, kind: input, shape index: {}]   ;;  %s2301_s13 = inlined_call_operand.vmem [shape: f32[1,32], index: 13, kind: input, shape index: {}]   ;;  %s2302_s14 = inlined_call_operand.vmem [shape: bf16[32,64], index: 14, kind: input, shape index: {}]   ;;  %s2303_s15 = inlined_call_operand.vmem [shape: f32[1,64], index: 15, kind: input, shape index: {}]   ;;  %s2304_s16 = inlined_call_operand.vmem [shape: bf16[64,32], index: 16, kind: input, shape index: {}]   ;;  %s2305_s17 = inlined_call_operand.vmem [shape: f32[1,32], index: 17, kind: input, shape index: {}]   ;;  %s2306_s18 = inlined_call_operand.hbm [shape: f32[2,8,32], index: 18, kind: output, shape index: {}]  }
   0x1   :  { %2314 = sst [smem:[#allocation13_spill]] %s2288_s0 }
   0x2   :  { %2315 = sst [smem:[#allocation14_spill]] %s2289_s1  ;;  %s2318_s29 = sld [smem:[#allocation13_spill]] }
   0x3   :  { %2316 = sst [smem:[#allocation15_spill]] %s2290_s2 }
   0x4   :  { %2317 = sst [smem:[#allocation16_spill]] %s2291_s3 }
   0x8   :  { %23 = sst [smem:[#allocation4]] %s2318_s29 }
   0x9   :  { %24 = vsyncpa [#allocation6], 0 }
   0xa   :  { %26 = vsyncpa [#allocation6 + $0x1], 0  ;;  %s2016_s30 = smov 0   ;;  %s2018_s0 = smov 0  }
   0xb   :  { %s2020_s19 = smov 0   ;;  %s2022_s1 = smov 0  }
   0xc   :  { %s2024_s20 = smov 0   ;;  %s2026_s21 = smov 0  }
   0xd LB: > { %2319 = sst [smem:[#allocation8_spill]] %s1877_s30  ;;  %s1550_s22 = sadd.s32 4294967295, %s1897_s21   ;;  %s1897_s21 = sphi %s2026_s21, %s32_s21   ;;  %s1893_s20 = sphi %s2024_s20, %s2337_s20   ;;  %s1889_s1 = sphi %s2022_s1, %s2336_s1   ;;  %s1885_s19 = sphi %s2020_s19, %s2340_s19   ;;  %s1881_s0 = sphi %s2018_s0, %s2339_s0   ;;  %s1877_s30 = sphi %s2016_s30, %s2338_s30  }
   0xe   : > { %2320 = sst [smem:[#allocation9_spill]] %s1893_s20  ;;  %s1551_s2 = sadd.s32 4294967294, %s1897_s21  }
   0xf   : > { %2321 = sst [smem:[#allocation10_spill]] %s1897_s21  ;;  %s44_s23 = sadd.s32 1, %s1893_s20 }
  0x10   : > { %s443_s24 = sadd.s32 1, %s1885_s19  ;;  %p46_p0 = scmp.ge.s32.totalorder %s44_s23, 2 }
  0x11   : > { %p453_p1 = scmp.ne.s32.totalorder %s1885_s19, %s1881_s0  ;;  %p454_p2 = scmp.eq.s32.totalorder %s1550_s22, 1 }
  0x12   : > { %p459_p3 = scmp.ne.s32.totalorder %s1881_s0, %s1877_s30  ;;  %s2342_s23 = smov (%p46_p0, %s44_s23), 0 }
  0x13   : > { %2322 = sst [smem:[#allocation11_spill]] %s2342_s23  ;;  %p2056_p4 = por %p454_p2, %p453_p1 }
  0x14   : > { %p460_p5 = scmp.eq.s32.totalorder %s1551_s2, 1  ;;  %s438_s26 = ssub.s32 %s1893_s20, %s2342_s23 }
  0x15   : > { %p1554_p6 = scmp.ge.s32.totalorder %s1897_s21, 1  ;;  %p441_p7 = scmp.eq.s32.totalorder %s438_s26, 0 }
  0x16   : > { %p2063_p8 = por %p460_p5, %p459_p3  ;;  %p543_p9 = scmp.lt.s32.totalorder %s1897_s21, 3 }
  0x17   : > { %s2069_s28 = scalar_select %p441_p7, %s1885_s19, %s443_s24  }
  0x18   : > { %s2324_s27 = scalar_select %p2063_p8, 1, 0 }
  0x19   : > { %p544_p10 = pnand %p1554_p6, %p543_p9 }
  0x1a   : > { %2325 = sst [smem:[#allocation12_spill]] %s2324_s27  ;;  %p603_p11 = scmp.lt.s32.totalorder (!%p544_p10), %s1889_s1, 1  ;;  %vm622_vm0 = vcmask (!%p544_p10), 261120   ;;  %v1559_v13 = vld [vmem:[%s2292_s4] ss:$0 sm:$0xff] (!%p544_p10) }
  0x1b   : > { %547 = sbr.rel (%p544_p10) target bundleno = 2724 (0xaa4), region = 92  ;;  %s2326_s26 = sld [smem:[#allocation14_spill]] (!%p544_p10) }
  0x1c   : > { %s2327_s21 = sld [smem:[#allocation15_spill]] (!%p544_p10)  ;;  %s2313_s23 = sand.u32 (!%p544_p10), 1, %s1881_s0  }
  0x1d   : > { %s2328_s3 = sld [smem:[#allocation16_spill]] (!%p544_p10) }
  0x22   : > { %s604_s29 = scalar_select %p603_p11, %s1889_s1, 1 }
  0x23   : > { %v1558_v11 = vld [vmem:[%s2328_s3] ss:$0 sm:$0xff] }
  0x24   : > { %s1556_s22 = sshll.u32 %s604_s29, 3  ;;  %s2089_s29 = sshll.u32 %s2313_s23, 3 }
  0x25   : > { %s2076_s20 = scalar_lea.vmem %s2326_s26, %s1556_s22  ;;  %s2081_s24 = scalar_lea.vmem %s2327_s21, %s1556_s22 }
  0x26   : > { %v619_v0 = vld [vmem:[%s2076_s20] sm:$0xff]  ;;  %s2098_s26 = smov 0  }
  0x27   : > { %v623_v1 = vsel %vm622_vm0, %v619_v0, 0.0 }
  0x28   : > { %624 = vadd.xlane.f32.xlu0 %v623_v1 }
  0xb5   : > { %v625_v2 = vpop.xlane.xlu0 %624 }
  0xb6   : > { %v627_v3 = vmul.f32 0.03125, %v625_v2 }
  0xb8   : > { %v628_v4 = vsub.f32 %v619_v0, %v627_v3 }
  0xba   : > { %v629_v5 = vmul.f32 %v628_v4, %v628_v4 }
  0xbc   : > { %v630_v6 = vsel %vm622_vm0, %v629_v5, 0.0 }
  0xbd   : > { %631 = vadd.xlane.f32.xlu0 %v630_v6 }
 0x14a   : > { %v632_v7 = vpop.xlane.xlu0 %631 }
 0x14b   : > { %v633_v8 = vmul.f32 0.03125, %v632_v7 }
 0x14d   : > { %v634_v9 = vadd.f32 1e-05, %v633_v8 }
 0x14f   : > { %1779 = vrsqrt.f32 %v634_v9 }
 0x159   : > { %v1780_v10 = vpop.eup %1779 }
 0x15a   : > { %v636_v12 = vmul.f32 %v1780_v10, %v628_v4 }
 0x15c   : > { %v643_v14 = vmul.f32 %v1558_v11, %v636_v12 }
 0x15e   : > { %v650_v15 = vadd.f32 %v1559_v13, %v643_v14 }
 0x160   : > { %v651_v16 = vpack.c.bf16 %v650_v15, %v650_v15 }
 0x161 LB: >> { %v1911_v17 = vmov 0.0   ;;  %vm1912_vm1 = vmmov 0   ;;  %s1606_s30 = sshll.u32 %s1901_s26, 4  ;;  %vm779_vm2 = vcmask 64512   ;;  %vm789_vm3 = vcmask 60416   ;;  %s1901_s26 = sphi %s2098_s26, %s657_s26  }
 0x162   : >> { %1632 = vmatprep.subr.bf16.mxu0 %v1911_v17  ;;  %1636 = vmatprep.mubr.msk.bf16.mxu0 %vm1912_vm1, %v1911_v17  ;;  %s660_s22 = scalar_lea.vmem %s2296_s8, %s1606_s30  ;;  %s721_s3 = scalar_lea.vmem %s2297_s9, %s1606_s30 }
 0x163   : >> { %1640 = vmatprep.subr.bf16.mxu1 %v1911_v17  ;;  %1644 = vmatprep.mubr.msk.bf16.mxu1 %vm1912_vm1, %v1911_v17  ;;  %v1781_v18 = vld [vmem:[%s660_s22] sm:$0xff]   ;;  %v1782_v19 = vld [vmem:[%s660_s22 + $0x8] sm:$0xff]  }
 0x164   : >> { %1633 = vmatpush3.bf16.msra.mxu0 %v1781_v18  ;;  %v1783_v20 = vld [vmem:[%s721_s3] sm:$0xff]   ;;  %v1784_v21 = vld [vmem:[%s721_s3 + $0x8] sm:$0xff]   ;;  %s1569_s3 = sshll.u32 %s1901_s26, 2  ;;  %s657_s26 = sadd.s32 1, %s1901_s26  }
 0x165   : >> { %1634 = vmatprep.subr.bf16.mxu0 %v1911_v17  ;;  %1641 = vmatpush3.bf16.msra.mxu1 %v1783_v20  ;;  %s793_s23 = scalar_lea.vmem [#allocation3], %s1569_s3  ;;  %s788_s2 = scalar_lea.vmem [#allocation2], %s1569_s3 }
 0x166   : >> { %1642 = vmatprep.subr.bf16.mxu1 %v1911_v17  ;;  %p654_p12 = scmp.ge.s32.totalorder %s657_s26, 4  }
 0x167   : > { %v797_v38 = vld [vmem:[%s2081_s24] sm:$0xff] (%p654_p12)  ;;  %s2120_s30 = sld [smem:[#allocation4]] (%p654_p12)  ;;  %v830_v45 = vlaneseq (%p654_p12)  ;;  %v1913_v48 = vmov (%p654_p12), 0.0   ;;  %v2136_v60 = vmov (%p654_p12), 0.0   ;;  %s2138_s3 = smov (%p654_p12), 0  }
 0x168   : >> { %1635 = vmatpush3.bf16.msra.mxu0 %v1782_v19  ;;  %v801_v39 = vsel (%p654_p12), %vm622_vm0, %v797_v38, 0.0  ;;  %v1571_v54 = vld [vmem:[%s2293_s5] ss:$0 sm:$0xff] (%p654_p12) }
 0x169   : >> { %1643 = vmatpush3.bf16.msra.mxu1 %v1784_v21  ;;  %v831_v46 = vshrl.u32 (%p654_p12), %v830_v45, 7  ;;  %v833_v47 = vand.u32 (%p654_p12), 127, %v830_v45  ;;  %v1572_v56 = vld [vmem:[%s2294_s6] ss:$0 sm:$0xff] (%p654_p12) }
 0x16b   : >> { %1637 = vmatmul.mubr.msk.bf16.vlgmr.msra.gmra.mrb[0].mxu0 %vm622_vm0, %v651_v16  ;;  %vm834_vm4 = vcmp.gt.s32.totalorder (%p654_p12), %v833_v47, %v831_v46 }
 0x16c   : >> { %1645 = vmatmul.mubr.msk.bf16.vlgmr.msra.gmra.mrb[0].mxu1 %vm622_vm0, %v651_v16  ;;  %v2124_v49 = vsel (%p654_p12), %vm834_vm4, -1e+30, %v1913_v48 }
 0x16d   : > { %s796_s26 = sand.u32 (%p654_p12), 2147483647, %s2120_s30 }
 0x23e   : >> { %v714_v22 = vpop.f32.mrb[0].mxu0 }
 0x23f   : >> { %v1638_v23 = vpop.f32.mrb[1].mxu0  ;;  %v778_v24 = vmul.f32 %v714_v22, %v714_v22  ;;  %v772_v28 = vpop.f32.mrb[0].mxu1 }
 0x240   : >> { %v717_v25 = vpop.f32.mrb[2].mxu0  ;;  %v1646_v29 = vpop.f32.mrb[1].mxu1  ;;  %v791_v32 = vpack.c.bf16 %v772_v28, %v772_v28 }
 0x241   : >> { %v1639_v26 = vpop.f32.mrb[3].mxu0  ;;  %v780_v27 = vsel %vm779_vm2, %v778_v24, 0.0  ;;  %v775_v30 = vpop.f32.mrb[2].mxu1 }
 0x242   : >> { %781 = vadd.xlane.f32.xlu0 %v780_v27  ;;  %v1647_v31 = vpop.f32.mrb[3].mxu1  ;;  %794 = vst.msk [vmem:[%s793_s23] sm:$0xf] %vm789_vm3, %v791_v32 }
 0x246   : > { %802 = vadd.xlane.f32.xlu0 (%p654_p12), %v801_v39 }
 0x2cf   : >> { %v782_v33 = vpop.xlane.xlu0 %781 }
 0x2d0   : >> { %v783_v34 = vmax.f32 %v782_v33, 1e-24 }
 0x2d2   : >> { %1785 = vrsqrt.f32 %v783_v34 }
 0x2d3   : > { %v803_v40 = vpop.xlane.xlu0 (%p654_p12), %802 }
 0x2d4   : > { %v805_v41 = vmul.f32 (%p654_p12), 0.03125, %v803_v40 }
 0x2d6   : > { %v806_v42 = vsub.f32 (%p654_p12), %v797_v38, %v805_v41 }
 0x2d8   : > { %v807_v43 = vmul.f32 (%p654_p12), %v806_v42, %v806_v42 }
 0x2da   : > { %v808_v44 = vsel (%p654_p12), %vm622_vm0, %v807_v43, 0.0 }
 0x2db   : > { %656 = sbr.rel (!%p654_p12) target bundleno = 353 (0x161), region = 166  ;;  %809 = vadd.xlane.f32.xlu0 (%p654_p12), %v808_v44 }
 0x2dc   : >> { %v1786_v35 = vpop.eup %1785 }
 0x2dd   : >> { %v785_v36 = vmul.f32 %v1786_v35, %v714_v22 }
 0x2df   : >> { %v786_v37 = vpack.c.bf16 %v785_v36, %v785_v36 }
 0x2e1   : >> { %790 = vst.msk [vmem:[%s788_s2] sm:$0xf] %vm789_vm3, %v786_v37 }
 0x368   : > { %v810_v50 = vpop.xlane.xlu0 %809 }
 0x369   : > { %v811_v51 = vmul.f32 0.03125, %v810_v50 }
 0x36b   : > { %v812_v52 = vadd.f32 1e-05, %v811_v51 }
 0x36d   : > { %1787 = vrsqrt.f32 %v812_v52 }
 0x377   : > { %v1788_v53 = vpop.eup %1787 }
 0x378   : > { %v814_v55 = vmul.f32 %v1788_v53, %v806_v42 }
 0x37a   : > { %v821_v57 = vmul.f32 %v1571_v54, %v814_v55 }
 0x37c   : > { %v2132_v58 = vadd.f32 %v1572_v56, %v821_v57 }
 0x37e   : > { %v829_v59 = vpack.c.bf16 %v2132_v58, %v2132_v58 }
 0x37f LB: >> { %v1914_v61 = vmov 0.0   ;;  %vm1915_vm5 = vmmov 0   ;;  %s1608_s23 = sshll.u32 %s1909_s3, 4  ;;  %s2159_s27 = sshll.u32 %s1909_s3, 2  ;;  %v914_v11 = vstv %s2120_s30  ;;  %vm1106_vm6 = vcmask 1043456   ;;  %s1909_s3 = sphi %s2138_s3, %s842_s3   ;;  %v1905_v60 = vphi %v2136_v60, %v2329_v60  }
 0x380   : >> { %1648 = vmatprep.subr.bf16.mxu0 %v1914_v61  ;;  %1652 = vmatprep.mubr.msk.bf16.mxu0 %vm1915_vm5, %v1914_v61  ;;  %s846_s21 = scalar_lea.vmem %s2295_s7, %s1608_s23  ;;  %s1042_s22 = scalar_lea.vmem [#allocation2], %s2159_s27  ;;  %v1093_v17 = vstv %s796_s26 }
 0x381   : >> { %1656 = vmatprep.subr.bf16.mxu1 %v1914_v61  ;;  %1658 = vmatprep.mubr.msk.bf16.mxu1 %vm1915_vm5, %v1914_v61  ;;  %v1789_v62 = vld [vmem:[%s846_s21] sm:$0xff]   ;;  %v1790_v63 = vld [vmem:[%s846_s21 + $0x8] sm:$0xff]   ;;  %s1045_s23 = scalar_lea.vmem [#allocation3], %s2159_s27  ;;  %s1155_s21 = scalar_lea.vmem %s2298_s10, %s2159_s27 }
 0x382   : >> { %1649 = vmatpush3.bf16.msra.mxu0 %v1789_v62  ;;  %v1043_v6 = vld [vmem:[%s1042_s22] sm:$0xf]  ;;  %s842_s3 = sadd.s32 1, %s1909_s3  }
 0x383   : >> { %1650 = vmatprep.subr.bf16.mxu0 %v1914_v61  ;;  %v1051_v7 = vsel %vm779_vm2, %v1043_v6, 0  ;;  %v1046_v15 = vld [vmem:[%s1045_s23] sm:$0xf]  ;;  %p839_p13 = scmp.ge.s32.totalorder %s842_s3, 4  }
 0x384   : >> { %1657 = vmatpush3.bf16.xpose.msra.mxu1 %v1051_v7  ;;  %v1108_v16 = vsel %vm1106_vm6, %v1046_v15, 0  ;;  %v1156_v28 = vld [vmem:[%s1155_s21] sm:$0xf]  ;;  %vm1916_vm7 = vmmov (%p839_p13), 0   ;;  %v1798_v55 = vld [vmem:[%s2302_s14 + $0x8] sm:$0xff] (%p839_p13)   ;;  %vm1356_vm8 = vcmask (%p839_p13), 523264  }
 0x385   : >> { %1668 = vmatprep.subr.bf16.mxu1 %v1914_v61  ;;  %v1161_v29 = vsel %vm1106_vm6, %v1156_v28, 0  ;;  %v1205_v43 = vld [vmem:[%s2076_s20] sm:$0xff] (%p839_p13)  ;;  %s1603_s20 = sshll.u32 (%p839_p13), %s1889_s1, 7  ;;  %s2330_s30 = scalar_lea.vmem (%p839_p13), [#allocation5], %s2089_s29 }
 0x386   : >> { %1651 = vmatpush3.bf16.msra.mxu0 %v1790_v63  ;;  %v1589_v44 = vld [vmem:[%s2299_s11] ss:$0 sm:$0xff] (%p839_p13)  ;;  %s1417_s26 = sshll.u32 (%p839_p13), %s2330_s30, 4  ;;  %s2236_s2 = scalar_lea.hbm (%p839_p13), %s2306_s18, %s1603_s20  ;;  %s2238_s26 = int_to_ptr.vmem [resolvable:$true] %s1417_s26 }
 0x387   : >> { %1662 = vmatprep.subr.bf16.mxu0 %v1914_v61  ;;  %v1797_v54 = vld [vmem:[%s2302_s14] sm:$0xff] (%p839_p13)   ;;  %s2331_s24 = smov (%p839_p13), %s2330_s30  ;;  %s2332_s1 = sand.u32 (%p839_p13), 1, %s1881_s0  }
 0x388   : > { %v1591_v62 = vld [vmem:[%s2301_s13] ss:$0 sm:$0xff] (%p839_p13)  ;;  %s1403_s21 = scalar_lea.sflag (%p839_p13), [#allocation6], %s2332_s1  ;;  %s1807_s27 = scalar_lea.vmem (%p839_p13), %s2238_s26, 128 }
 0x389   : >> { %1653 = vmatmul.mubr.msk.bf16.vlgmr.msra.gmra.mrb[0].mxu0 %vm622_vm0, %v829_v59  ;;  %v1592_v6 = vld [vmem:[%s2303_s15] ss:$0 sm:$0xff] (%p839_p13)  ;;  %p1808_p0 = scmp.ne.s32.totalorder (%p839_p13), %s2238_s26, %s1807_s27  ;;  %s1917_s22 = smov (%p839_p13), [#allocation5]  }
 0x38a   : >> { %1664 = vmatprep.mubr.msk.bf16.mxu0 %vm1915_vm5, %v1914_v61  ;;  %1663 = vmatpush3.bf16.msra.mxu0 %v1108_v16  ;;  %s1811_s30 = sshll.u32 (%p839_p13), %s1917_s22, 4  ;;  %s1812_s30 = int_to_ptr.vmem [resolvable:$false] %s1811_s30 }
 0x38b   : > { %1674 = vmatprep.subr.bf16.mxu0 (%p839_p13), %v1913_v48  ;;  %p1809_p1 = pnand (%p839_p13), %p1808_p0, %p2056_p4  ;;  %s1813_s20 = scalar_lea.vmem (%p839_p13), %s1812_s30, 256 }
 0x38c   : > { %p1814_p3 = scmp.lt.s32.totalorder (%p839_p13), %s2238_s26, %s1812_s30  ;;  %p1815_p5 = scmp.lt.s32.totalorder (%p839_p13), %s1813_s20, %s1807_s27 }
 0x38d   : > { %p1810_p2 = pneg (%p839_p13), %p1809_p1 }
 0x38e   : > { %p1816_p6 = por (%p839_p13), %p1815_p5, %p1814_p3 }
 0x390   : > { %p1817_p7 = pnand (%p839_p13), %p1816_p6, %p1810_p2 }
 0x45c   : >> { %v900_v0 = vpop.f32.mrb[0].mxu0 }
 0x45d   : >> { %v1654_v1 = vpop.f32.mrb[1].mxu0  ;;  %v906_v2 = vmul.f32 %v900_v0, %v900_v0 }
 0x45e   : >> { %v903_v3 = vpop.f32.mrb[2].mxu0 }
 0x45f   : >> { %v1655_v4 = vpop.f32.mrb[3].mxu0  ;;  %v908_v5 = vsel %vm779_vm2, %v906_v2, 0.0  ;;  %v1799_v2 = vld [vmem:[%s2304_s16] sm:$0xff] (%p839_p13)   ;;  %v1800_v3 = vld [vmem:[%s2304_s16 + $0x8] sm:$0xff] (%p839_p13)  }
 0x460   : >> { %909 = vadd.xlane.f32.xlu0 %v908_v5  ;;  %v1801_v4 = vld [vmem:[%s2304_s16 + $0x10] sm:$0xff] (%p839_p13)   ;;  %v1802_v5 = vld [vmem:[%s2304_s16 + $0x18] sm:$0xff] (%p839_p13)  }
 0x4ed   : >> { %v910_v8 = vpop.xlane.xlu0 %909 }
 0x4ee   : >> { %v911_v9 = vmax.f32 %v910_v8, 1e-24 }
 0x4f0   : >> { %1791 = vrsqrt.f32 %v911_v9 }
 0x4fa   : >> { %v1792_v10 = vpop.eup %1791 }
 0x4fb   : >> { %v913_v12 = vmul.f32 %v1792_v10, %v900_v0 }
 0x4fd   : >> { %v915_v13 = vmul.f32 %v914_v11, %v913_v12 }
 0x4ff   : >> { %v916_v14 = vpack.c.bf16 %v915_v13, %v915_v13 }
 0x501   : >> { %1659 = vmatmul.mubr.msk.bf16.vlgmr.msra.gmra.mrb[0].mxu1 %vm779_vm2, %v916_v14 }
 0x502   : >> { %1670 = vmatprep.mubr.msk.bf16.mxu1 %vm1915_vm5, %v1914_v61  ;;  %1669 = vmatpush3.bf16.msra.mxu1 %v1161_v29 }
 0x503   : > { %1682 = vmatprep.subr.bf16.mxu1 (%p839_p13), %v1913_v48 }
 0x5d4   : >> { %v1087_v18 = vpop.f32.mrb[0].mxu1 }
 0x5d5   : >> { %v1094_v19 = vsub.f32 %v1087_v18, %v1093_v17  ;;  %v1660_v20 = vpop.f32.mrb[1].mxu1  ;;  %v1596_v17 = vld [vmem:[%s2305_s17] ss:$0 sm:$0xff] (%p839_p13) }
 0x5d6   : >> { %v1090_v21 = vpop.f32.mrb[2].mxu1 }
 0x5d7   : >> { %v1095_v22 = vadd.f32 %v1094_v19, %v2124_v49  ;;  %v1661_v23 = vpop.f32.mrb[3].mxu1 }
 0x5d9   : >> { %v1096_v24 = vmul.f32 1.442695, %v1095_v22 }
 0x5db   : >> { %1793 = vpow2.f32 %v1096_v24 }
 0x5e5   : >> { %v1794_v25 = vpop.eup %1793 }
 0x5e6   : >> { %v1098_v26 = vsel %vm779_vm2, %v1794_v25, 0.0  ;;  %v1102_v27 = vpack.c.bf16 %v1794_v25, %v1794_v25 }
 0x5e7   : >> { %1099 = vadd.xlane.f32.xlu0 %v1098_v26 }
 0x5e8   : >> { %1665 = vmatmul.mubr.msk.bf16.vlgmr.msra.gmra.mrb[4].mxu0 %vm779_vm2, %v1102_v27 }
 0x5e9   : > { %1678 = vmatprep.mubr.msk.bf16.mxu0 (%p839_p13), %vm1916_vm7, %v1913_v48  ;;  %1675 = vmatpush3.bf16.msra.mxu0 (%p839_p13), %v1797_v54 }
 0x5ea   : > { %1676 = vmatprep.subr.bf16.mxu0 (%p839_p13), %v1913_v48 }
 0x5ed   : > { %1677 = vmatpush3.bf16.msra.mxu0 (%p839_p13), %v1798_v55 }
 0x674   : >> { %v1100_v30 = vpop.xlane.xlu0 %1099 }
 0x675   : >> { %1795 = vrcp.f32 %v1100_v30 }
 0x67f   : >> { %v1796_v31 = vpop.eup %1795 }
 0x6bb   : >> { %v1144_v32 = vpop.f32.mrb[4].mxu0 }
 0x6bc   : >> { %v1152_v33 = vmul.f32 %v1796_v31, %v1144_v32  ;;  %v1666_v34 = vpop.f32.mrb[5].mxu0 }
 0x6bd   : >> { %v1147_v35 = vpop.f32.mrb[6].mxu0 }
 0x6be   : >> { %v1153_v36 = vpack.c.bf16 %v1152_v33, %v1152_v33  ;;  %v1667_v37 = vpop.f32.mrb[7].mxu0 }
 0x6c0   : >> { %1671 = vmatmul.mubr.msk.bf16.vlgmr.msra.gmra.mrb[4].mxu1 %vm779_vm2, %v1153_v36 }
 0x6c1   : > { %1690 = vmatprep.mubr.msk.bf16.mxu1 (%p839_p13), %vm1916_vm7, %v1913_v48  ;;  %1683 = vmatpush3.bf16.msra.mxu1 (%p839_p13), %v1799_v2 }
 0x6c2   : > { %1684 = vmatprep.subr.bf16.mxu1 (%p839_p13), %v1913_v48 }
 0x6c5   : > { %1685 = vmatpush3.bf16.msra.mxu1 (%p839_p13), %v1800_v3 }
 0x6c6   : > { %1686 = vmatprep.subr.bf16.mxu1 (%p839_p13), %v1913_v48 }
 0x6c9   : > { %1687 = vmatpush3.bf16.msra.mxu1 (%p839_p13), %v1801_v4 }
 0x6ca   : > { %1688 = vmatprep.subr.bf16.mxu1 (%p839_p13), %v1913_v48 }
 0x6cd   : > { %1689 = vmatpush3.bf16.msra.mxu1 (%p839_p13), %v1802_v5 }
 0x790   : > { %841 = sbr.rel (!%p839_p13) target bundleno = 895 (0x37f), region = 188 }
 0x793   : >> { %v1197_v38 = vpop.f32.mrb[4].mxu1 }
 0x794   : >> { %v1203_v39 = vadd.f32 %v1905_v60, %v1197_v38   ;;  %v1672_v40 = vpop.f32.mrb[5].mxu1 }
 0x795   : >> { %v1200_v41 = vpop.f32.mrb[6].mxu1 }
 0x796   : >> { %v1673_v42 = vpop.f32.mrb[7].mxu1  ;;  %v2329_v60 = vmov %v1203_v39  ;;  %v1206_v45 = vadd.f32 (%p839_p13), %v1205_v43, %v1203_v39 }
 0x797   : > { %v1590_v60 = vld [vmem:[%s2300_s12] ss:$0 sm:$0xff] }
 0x798   : > { %v1214_v46 = vadd.f32 %v1589_v44, %v1206_v45 }
 0x79a   : > { %v1217_v47 = vsel %vm622_vm0, %v1214_v46, 0.0 }
 0x79b   : > { %1218 = vadd.xlane.f32.xlu0 %v1217_v47 }
 0x828   : > { %v1219_v50 = vpop.xlane.xlu0 %1218 }
 0x829   : > { %v1220_v51 = vmul.f32 0.03125, %v1219_v50 }
 0x82b   : > { %v1221_v52 = vsub.f32 %v1214_v46, %v1220_v51 }
 0x82d   : > { %v1222_v53 = vmul.f32 %v1221_v52, %v1221_v52 }
 0x82f   : > { %v1223_v49 = vsel %vm622_vm0, %v1222_v53, 0.0 }
 0x830   : > { %1224 = vadd.xlane.f32.xlu0 %v1223_v49 }
 0x8bd   : > { %v1225_v56 = vpop.xlane.xlu0 %1224 }
 0x8be   : > { %v1226_v57 = vmul.f32 0.03125, %v1225_v56 }
 0x8c0   : > { %v1227_v58 = vadd.f32 1e-05, %v1226_v57 }
 0x8c2   : > { %1803 = vrsqrt.f32 %v1227_v58 }
 0x8cc   : > { %v1804_v59 = vpop.eup %1803 }
 0x8cd   : > { %v1229_v61 = vmul.f32 %v1804_v59, %v1221_v52 }
 0x8cf   : > { %v1236_v63 = vmul.f32 %v1590_v60, %v1229_v61 }
 0x8d1   : > { %v1243_v0 = vadd.f32 %v1591_v62, %v1236_v63 }
 0x8d3   : > { %v1244_v1 = vpack.c.bf16 %v1243_v0, %v1243_v0 }
 0x8d5   : > { %1679 = vmatmul.mubr.msk.bf16.vlgmr.msra.gmra.mrb[0].mxu0 %vm622_vm0, %v1244_v1 }
 0x9a8   : > { %v1305_v7 = vpop.f32.mrb[0].mxu0 }
 0x9a9   : > { %v1306_v8 = vadd.f32 %v1592_v6, %v1305_v7  ;;  %v1680_v9 = vpop.f32.mrb[1].mxu0 }
 0x9aa   : > { %v1308_v10 = vpop.f32.mrb[2].mxu0 }
 0x9ab   : > { %v1312_v11 = vmul.f32 0.70710677, %v1306_v8  ;;  %v1681_v12 = vpop.f32.mrb[3].mxu0  ;;  %v1311_v48 = vmul.f32 0.5, %v1306_v8 }
 0x9ad   : > { %1805 = verf.f32 %v1312_v11 }
 0x9b7   : > { %v1806_v13 = vpop.eup %1805 }
 0x9b8   : > { %v1314_v14 = vadd.f32 1.0, %v1806_v13 }
 0x9ba   : > { %v1315_v15 = vmul.f32 %v1314_v14, %v1311_v48 }
 0x9bc   : > { %v1316_v16 = vpack.c.bf16 %v1315_v15, %v1315_v15 }
 0x9be   : > { %1691 = vmatmul.mubr.msk.bf16.vlgmr.msra.gmra.mrb[0].mxu1 %vm1356_vm8, %v1316_v16 }
 0xa91   : > { %v1394_v18 = vpop.f32.mrb[0].mxu1 }
 0xa92   : > { %v1395_v19 = vadd.f32 %v1596_v17, %v1394_v18  ;;  %v1692_v20 = vpop.f32.mrb[1].mxu1 }
 0xa93   : > { %v1397_v21 = vpop.f32.mrb[2].mxu1 }
 0xa94   : > { %v1400_v22 = vadd.f32 %v1395_v19, %v1214_v46  ;;  %v1693_v23 = vpop.f32.mrb[3].mxu1 }
 0xa96   : > { %1401 = vst.msk [vmem:[%s2331_s24] sm:$0xff] %vm622_vm0, %v1400_v22 }
 0xa97   : > { %1820 = shalt.err (!%p1817_p7)
}
 0xa98   : > { %s1821_s29 = scalar_lea.hbm %s2236_s2, 128  ;;  %s1825_s24 = scalar_lea.hbm %s2306_s18, 256 }
 0xa99   : > { %p1822_p9 = scmp.ne.s32.totalorder %s2236_s2, %s1821_s29  ;;  %p1826_p12 = scmp.lt.u32.totalorder %s2236_s2, %s2306_s18 }
 0xa9a   : > { %p1827_p13 = scmp.lt.u32.totalorder %s1825_s24, %s1821_s29  ;;  %p1829_p1 = scmp.lt.u32.totalorder %s1821_s29, %s2236_s2 }
 0xa9b   : > { %p1823_p10 = pnand %p1822_p9, %p2056_p4 }
 0xa9c   : > { %p1828_p0 = por %p1827_p13, %p1826_p12 }
 0xa9d   : > { %p1824_p11 = pneg %p1823_p10 }
 0xa9e   : > { %p1830_p2 = por %p1829_p1, %p1828_p0 }
 0xaa0   : > { %p1831_p3 = pnand %p1830_p2, %p1824_p11 }
 0xaa2   : > { %1834 = shalt.err (!%p1831_p3)
}
 0xaa3   : > { %1694 = dma.vmem_to_hbm [thread:$0]  (%p2056_p4), %s2238_s26, 128, %s2236_s2, %s1403_s21  }
 0xaa4 PF: > { %s2333_s27 = sld [smem:[#allocation10_spill]]  ;;  %s2334_s30 = sld [smem:[#allocation8_spill]] }
 0xaaa   : > { %p1700_p5 = scmp.ge.s32.totalorder %s2333_s27, 2  ;;  %s1429_s3 = sand.u32 1, %s2334_s30  }
 0xaab   : > { %s1430_s23 = scalar_lea.sflag [#allocation6], %s1429_s3 }
 0xaac   : > { %p1697_p6 = pnand %p1700_p5, %p2063_p8 }
 0xaae   : > { %1872 = dma.done.wait (!%p1697_p6), %s1430_s23, 128  }
 0xaaf   : > { %1874 = vsyncadd (!%p1697_p6), %s1430_s23, 4294967168  ;;  %s32_s21 = sadd.s32 1, %s2333_s27   ;;  %s2336_s1 = sld [smem:[#allocation9_spill]] }
 0xab0   : > { %p29_p7 = scmp.ge.s32.totalorder %s32_s21, 4   ;;  %s2337_s20 = sld [smem:[#allocation11_spill]] }
 0xab1   : > { %s2338_s30 = smov %s1881_s0  ;;  %s2339_s0 = smov %s1885_s19 }
 0xab2   : > { %s2340_s19 = smov %s2069_s28  ;;  %31 = sbr.rel (!%p29_p7) target bundleno = 13 (0xd), region = 199 }
 0xab9   :  { %1435 = vsyncpa [#allocation6], 1 }
 0xaba   :  { %1437 = vsyncpa [#allocation6 + $0x1], 1 }

</bundles_post_ra>
